<compile_context>
chip_gen: v5e
topology: v5e:2x2
jax: 0.10.0
libtpu: 0.0.40
codegen_flags: <defaults>
</compile_context>

<pallas_src>
import jax
import jax.numpy as jnp
from jax.experimental import pallas as pl
from jax.experimental.pallas import tpu as pltpu

_LANES = 128
_SUBLANES = 8


def _make_partial_mse_kernel(rows, row_tile, steps_per_split, needs_mask):
    """Kernel computing per-split (8, 128) partial sums of (x - t)^2."""
    n_sub = row_tile // _SUBLANES

    def kernel(x_ref, t_ref, out_ref):
        s = pl.program_id(0)  # split index (parallel axis, one per core on v7x)
        i = pl.program_id(1)  # step within split (reduction axis, arbitrary)

        @pl.when(i == 0)
        def _():
            out_ref[...] = jnp.zeros_like(out_ref)

        d = x_ref[...].astype(jnp.float32) - t_ref[...].astype(jnp.float32)
        sq = d * d

        if needs_mask:
            # Zero out rows past the end of the array (ragged last block) and
            # fully-phantom steps (clamped block re-reads).  jnp.where is a
            # select, so garbage/NaN in masked-off rows cannot propagate.
            logical_blk = s * steps_per_split + i
            valid = rows - logical_blk * row_tile  # may be <= 0 for phantom steps
            row_ids = jax.lax.broadcasted_iota(jnp.int32, (row_tile, _LANES), 0)
            sq = jnp.where(row_ids < valid, sq, jnp.float32(0.0))

        # (row_tile, 128) -> (row_tile//8, 8, 128); sum over the leading axis is
        # pure VPU adds into the resident (8, 128) accumulator block.
        out_ref[...] += jnp.sum(sq.reshape(n_sub, _SUBLANES, _LANES), axis=0)

    return kernel


def content_loss_forward(x, target, *, row_tile=1024, num_splits=2):
    """Pallas ContentLoss.forward: returns (input, mse_loss(input, target))."""
    assert x.shape == target.shape, "input and target must have the same shape"
    total = int(x.size)
    # TODO(synk): support total % 128 != 0 (fully general F.mse_loss shapes)
    # with a lane-masked tail block; conv feature maps here are 128-divisible.
    assert total % _LANES == 0, "flattened size must be a multiple of 128"
    rows = total // _LANES

    # Keep the HBM dtype (no wrapper-side upcast); row-major reshape is free.
    x2 = x.reshape(rows, _LANES)
    t2 = target.reshape(rows, _LANES)

    # Tiny inputs (< 8 rows, i.e. < 4 KiB): pad both operands to one (8, 128)
    # tile.  Zero-padding both sides contributes exactly 0 to the sum, and the
    # copy is negligible at this size (large inputs never hit this path).
    if rows < _SUBLANES:
        pad = _SUBLANES - rows
        x2 = jnp.pad(x2, ((0, pad), (0, 0)))
        t2 = jnp.pad(t2, ((0, pad), (0, 0)))
        rows = _SUBLANES

    # Row tile: a multiple of 8, no larger than the 8-aligned row count
    # (avoids blocks larger than the array for small feature maps).
    row_tile = max(_SUBLANES, (int(row_tile) // _SUBLANES) * _SUBLANES)
    row_tile = min(row_tile, (rows // _SUBLANES) * _SUBLANES)

    n_blocks = (rows + row_tile - 1) // row_tile
    num_splits = max(1, min(int(num_splits), n_blocks))
    steps_per_split = (n_blocks + num_splits - 1) // num_splits
    needs_mask = (n_blocks * row_tile != rows) or (
        num_splits * steps_per_split != n_blocks
    )

    def in_index_map(s, i):
        blk = s * steps_per_split + i
        return (jnp.minimum(blk, n_blocks - 1), 0)  # clamp phantom steps in-bounds

    kernel = _make_partial_mse_kernel(rows, row_tile, steps_per_split, needs_mask)

    partials = pl.pallas_call(
        kernel,
        out_shape=jax.ShapeDtypeStruct(
            (num_splits * _SUBLANES, _LANES), jnp.float32
        ),
        grid=(num_splits, steps_per_split),
        in_specs=[
            pl.BlockSpec((row_tile, _LANES), in_index_map),
            pl.BlockSpec((row_tile, _LANES), in_index_map),
        ],
        out_specs=pl.BlockSpec((_SUBLANES, _LANES), lambda s, i: (s, 0)),
        compiler_params=pltpu.CompilerParams(
            dimension_semantics=("parallel", "arbitrary"),
        ),
        cost_estimate=pl.CostEstimate(
            flops=3 * total,
            transcendentals=0,
            bytes_accessed=2 * total * x.dtype.itemsize
            + num_splits * _SUBLANES * _LANES * 4,
        ),
    )(x2, t2)

    # One tiny final reduce + mean normalization (divide by the TRUE element
    # count, independent of any tiny-input padding).
    loss = jnp.sum(partials) / jnp.float32(total)

    # Module returns `input` unchanged; `loss` mirrors `self.loss`.
    return x, loss


if __name__ == "__main__":
    key = jax.random.PRNGKey(0)
    k_x, k_t = jax.random.split(key)

    # Small NCHW feature maps consistent with the module's usage.
    B, C, H, W = 2, 4, 16, 16
    x = jax.random.normal(k_x, (B, C, H, W), dtype=jnp.float32)
    target = jax.random.normal(k_t, (B, C, H, W), dtype=jnp.float32)  # "detached"

    out, loss = content_loss_forward(x, target)
    out = jax.block_until_ready(out)
    loss = jax.block_until_ready(loss)

    ref_loss = jnp.mean((x - target) ** 2)
    assert jnp.allclose(loss, ref_loss, rtol=1e-5, atol=1e-6), (loss, ref_loss)
    assert jnp.array_equal(out, x)

    # Second check exercising the ragged-tail mask + multi-split path
    # (10 rows, 8-row tiles -> ragged last block and a phantom-step clamp).
    x_r = jax.random.normal(k_x, (1, 5, 16, 16), dtype=jnp.float32)
    t_r = jax.random.normal(k_t, (1, 5, 16, 16), dtype=jnp.float32)
    _, loss_r = content_loss_forward(x_r, t_r, row_tile=8, num_splits=2)
    loss_r = jax.block_until_ready(loss_r)
    ref_r = jnp.mean((x_r - t_r) ** 2)
    assert jnp.allclose(loss_r, ref_r, rtol=1e-5, atol=1e-6), (loss_r, ref_r)

    print("KERNEL_OK")
</pallas_src>

<mosaic_0001>
module attributes {stable_mosaic.version = 11 : i64} {
  func.func @kernel(%arg0: i32, %arg1: i32, %arg2: memref<16x128xf32, #tpu.memory_space<vmem>>, %arg3: memref<16x128xf32, #tpu.memory_space<vmem>>, %arg4: memref<8x128xf32, #tpu.memory_space<vmem>>) attributes {dimension_semantics = [#tpu.dimension_semantics<parallel>, #tpu.dimension_semantics<arbitrary>], iteration_bounds = array<i64: 1, 1>, scalar_prefetch = 0 : i64, scratch_operands = 0 : i64, tpu.core_type = #tpu.core_type<tc>, window_params = [{transform_indices = @transform_0, window_bounds = array<i64: 16, 128>}, {transform_indices = @transform_1, window_bounds = array<i64: 16, 128>}, {transform_indices = @transform_2, window_bounds = array<i64: 8, 128>}]} {
    %c0_i32 = arith.constant 0 : i32
    %0 = arith.cmpi eq, %arg1, %c0_i32 : i32
    %1 = arith.extui %0 : i1 to i32
    %c0_i32_0 = arith.constant 0 : i32
    %2 = arith.cmpi ne, %1, %c0_i32_0 : i32
    scf.if %2 {
      %cst_8 = arith.constant 0.000000e+00 : f32
      %12 = vector.broadcast %cst_8 : f32 to vector<8x128xf32>
      %c0_9 = arith.constant 0 : index
      %c0_10 = arith.constant 0 : index
      %13 = vector.load %arg4[%c0_9, %c0_10] : memref<8x128xf32, #tpu.memory_space<vmem>>, vector<8x128xf32>
      tpu.vector_store %arg4[%c0_9, %c0_10], %12 {strides = array<i32>} : memref<8x128xf32, #tpu.memory_space<vmem>>, vector<8x128xf32>,
    } else {
    }
    %c0 = arith.constant 0 : index
    %c0_1 = arith.constant 0 : index
    %3 = vector.load %arg2[%c0, %c0_1] : memref<16x128xf32, #tpu.memory_space<vmem>>, vector<16x128xf32>
    %c0_2 = arith.constant 0 : index
    %c0_3 = arith.constant 0 : index
    %4 = vector.load %arg3[%c0_2, %c0_3] : memref<16x128xf32, #tpu.memory_space<vmem>>, vector<16x128xf32>
    %5 = arith.subf %3, %4 : vector<16x128xf32>
    %6 = arith.mulf %5, %5 : vector<16x128xf32>
    %c0_4 = arith.constant 0 : index
    %c0_5 = arith.constant 0 : index
    %7 = vector.load %arg4[%c0_4, %c0_5] : memref<8x128xf32, #tpu.memory_space<vmem>>, vector<8x128xf32>
    %8 = vector.shape_cast %6 : vector<16x128xf32> to vector<2x8x128xf32>
    %cst = arith.constant dense<0.000000e+00> : vector<8x128xf32>
    %9 = vector.multi_reduction <add>, %8, %cst [0] : vector<2x8x128xf32> to vector<8x128xf32>
    %10 = arith.addf %7, %9 : vector<8x128xf32>
    %c0_6 = arith.constant 0 : index
    %c0_7 = arith.constant 0 : index
    %11 = vector.load %arg4[%c0_6, %c0_7] : memref<8x128xf32, #tpu.memory_space<vmem>>, vector<8x128xf32>
    tpu.vector_store %arg4[%c0_6, %c0_7], %10 {strides = array<i32>} : memref<8x128xf32, #tpu.memory_space<vmem>>, vector<8x128xf32>,
    return
  }
  func.func @transform_0(%arg0: i32, %arg1: i32) -> (i32, i32) {
    %c1_i32 = arith.constant 1 : i32
    %0 = arith.muli %arg0, %c1_i32 : i32
    %1 = arith.addi %0, %arg1 : i32
    %c0_i32 = arith.constant 0 : i32
    %2 = arith.minsi %1, %c0_i32 : i32
    %c0_i32_0 = arith.constant 0 : i32
    %c0_i32_1 = arith.constant 0 : i32
    return %2, %c0_i32_0 : i32, i32
  }
  func.func @transform_1(%arg0: i32, %arg1: i32) -> (i32, i32) {
    %c1_i32 = arith.constant 1 : i32
    %0 = arith.muli %arg0, %c1_i32 : i32
    %1 = arith.addi %0, %arg1 : i32
    %c0_i32 = arith.constant 0 : i32
    %2 = arith.minsi %1, %c0_i32 : i32
    %c0_i32_0 = arith.constant 0 : i32
    %c0_i32_1 = arith.constant 0 : i32
    return %2, %c0_i32_0 : i32, i32
  }
  func.func @transform_2(%arg0: i32, %arg1: i32) -> (i32, i32) {
    %c0_i32 = arith.constant 0 : i32
    %c0_i32_0 = arith.constant 0 : i32
    return %arg0, %c0_i32 : i32, i32
  }
}

</mosaic_0001>

<bundles_post_ra>
// kernel: tpu_custom_call.1
= control target key start
LH: loop header
LB: loop body
LE: loop exit
PB: predicated region body
PF: predicated region fallthrough
CT: control target
= control target key end

     0   :  { %7 = vsyncpa [#allocation3], 0  ;;  %s216_s0 = inlined_call_operand.hbm [shape: f32[16,128], index: 0, kind: input, shape index: {}]   ;;  %s217_s1 = inlined_call_operand.hbm [shape: f32[16,128], index: 1, kind: input, shape index: {}]   ;;  %s218_s2 = inlined_call_operand.hbm [shape: f32[8,128], index: 2, kind: output, shape index: {}]  }
   0x1   :  { %8 = vsyncpa [#allocation6], 0 }
   0x2   :  { %9 = vsyncpa [#allocation4], 0  ;;  %s20_s11 = sshll.u32 %s216_s0, 4  ;;  %s187_s12 = smov [#allocation2]   ;;  %s21_s11 = int_to_ptr.hbm [resolvable:$true] %s20_s11 }
   0x3   :  { %s22_s13 = sshll.u32 %s187_s12, 4  ;;  %s39_s16 = sshll.u32 %s217_s1, 4  ;;  %s23_s13 = int_to_ptr.vmem [resolvable:$true] %s22_s13  ;;  %s40_s16 = int_to_ptr.hbm [resolvable:$true] %s39_s16 }
   0x4   :  { %s188_s17 = smov 128   ;;  %s189_s18 = smov 8  }
   0x5   :  { %28 = dma.hbm_to_vmem [thread:$0]  %s21_s11, 256, %s23_s13, [#allocation3], %s188_s17, %s188_s17, %s189_s18  }
   0x6   :  { %s190_s19 = smov [#allocation5]  }
   0x7   :  { %s41_s20 = sshll.u32 %s190_s19, 4  ;;  %s42_s20 = int_to_ptr.vmem [resolvable:$true] %s41_s20 }
   0x8   :  { %47 = dma.hbm_to_vmem [thread:$0]  %s40_s16, 256, %s42_s20, [#allocation6], %s188_s17, %s188_s17, %s189_s18  }
   0x9   :  { %181 = dma.done.wait [#allocation3], 256  }
   0xa   :  { %182 = vsyncadd [#allocation3], 4294967040 }
   0xb   :  { %183 = dma.done.wait [#allocation6], 256  }
   0xc   :  { %184 = vsyncadd [#allocation6], 4294967040  ;;  %v69_v0 = vld [vmem:[#allocation2] sm:$0xff]  ;;  %v70_v1 = vld [vmem:[#allocation2 + $0x8] sm:$0xff]  ;;  %s191_s0 = smov [#allocation7]   ;;  %s88_s23 = sshll.u32 %s218_s2, 4  ;;  %s89_s23 = int_to_ptr.hbm [resolvable:$true] %s88_s23 }
   0xd   :  { %v71_v2 = vld [vmem:[#allocation5] sm:$0xff]  ;;  %v72_v3 = vld [vmem:[#allocation5 + $0x8] sm:$0xff]  ;;  %s86_s1 = sshll.u32 %s191_s0, 4  ;;  %s87_s1 = int_to_ptr.vmem [resolvable:$true] %s86_s1 }
   0xe   :  { %v73_v4 = vsub.f32 %v69_v0, %v71_v2  ;;  %v74_v5 = vsub.f32 %v70_v1, %v72_v3 }
  0x10   :  { %v75_v6 = vmul.f32 %v73_v4, %v73_v4  ;;  %v76_v7 = vmul.f32 %v74_v5, %v74_v5 }
  0x12   :  { %v78_v8 = vadd.f32 %v76_v7, %v75_v6 }
  0x14   :  { %80 = vst [vmem:[#allocation7] sm:$0xff] %v78_v8 }
  0x15   :  { %91 = dma.vmem_to_hbm [thread:$0]  %s87_s1, 128, %s89_s23, [#allocation4]  }
  0x16   :  { %185 = dma.done.wait [#allocation4], 128  }
  0x17   :  { %186 = vsyncadd [#allocation4], 4294967168 }
  0x18   :  { %96 = vsyncpa [#allocation3], 1 }
  0x19   :  { %97 = vsyncpa [#allocation6], 1 }
  0x1a   :  { %98 = vsyncpa [#allocation4], 1 }

</bundles_post_ra>
